<compile_context>
chip_gen: v6e
topology: v6e:2x2x1
jax: 0.10.0
libtpu: 0.0.40
codegen_flags: <defaults>
</compile_context>

<pallas_src>
import functools
import math

import jax
import jax.numpy as jnp
from jax.experimental import pallas as pl
from jax.experimental.pallas import tpu as pltpu


# ----------------------------- Pallas kernels ------------------------------ #

def _embed_kernel(patch_ref, convw_ref, poscls_ref, g_ref, b_ref, o_ref):
    """Patch-embed matmul + (cls-folded) pos add + ln_pre; one dense store.

    patch_ref : (nb*S_pad, C*P*P) bf16, row 0 of each frame / tail rows zero.
    poscls_ref: (S_pad, W) fp32 positional embedding with cls folded into row 0.
    o_ref     : (nb, S_pad, W) bf16.
    """
    nb, s_pad, width = o_ref.shape
    emb = jnp.dot(patch_ref[...], convw_ref[...],
                  preferred_element_type=jnp.float32)          # (nb*S_pad, W) f32
    tok = emb.reshape(nb, s_pad, width) + poscls_ref[...]
    mu = jnp.mean(tok, axis=-1, keepdims=True)
    var = jnp.mean(jnp.square(tok - mu), axis=-1, keepdims=True)
    y = (tok - mu) * jax.lax.rsqrt(var + 1e-5) * g_ref[...] + b_ref[...]
    o_ref[...] = y.astype(o_ref.dtype)


def _block_kernel(x_ref,
                  ln1_g, ln1_b, wqkv, bqkv, wo, bo,
                  ln2_g, ln2_b, w1, b1, w2, b2,
                  o_ref, *, n_heads, seq_real):
    """One CLIP ResidualAttentionBlock on Nb sequences (Nb, S, W), bf16 I/O."""
    x = x_ref[...].astype(jnp.float32)               # (Nb, S, W) fp32 residual
    nb, seq, width = x.shape
    dh = width // n_heads
    scale = 1.0 / math.sqrt(dh)
    tokens = nb * seq

    def ln(v, g_r, b_r):
        mu = jnp.mean(v, axis=-1, keepdims=True)
        var = jnp.mean(jnp.square(v - mu), axis=-1, keepdims=True)
        return (v - mu) * jax.lax.rsqrt(var + 1e-5) * g_r[...] + b_r[...]

    # ---- multi-head self-attention (pre-LN), fused QKV projection ----
    h = ln(x, ln1_g, ln1_b)
    qkv = jnp.dot(h.reshape(tokens, width).astype(jnp.bfloat16), wqkv[...],
                  preferred_element_type=jnp.float32) + bqkv[...]   # (Nb*S, 3W)

    def split_heads(v2d):
        # (tokens, W) -> (nb*heads, seq, dh)
        return (v2d.reshape(nb, seq, n_heads, dh)
                   .transpose(0, 2, 1, 3)
                   .reshape(nb * n_heads, seq, dh))

    qh = split_heads(qkv[:, 0:width]).astype(jnp.bfloat16)
    kh = split_heads(qkv[:, width:2 * width]).astype(jnp.bfloat16)
    vh = split_heads(qkv[:, 2 * width:3 * width]).astype(jnp.bfloat16)

    # additive key-padding bias (sequence padded to a multiple of 8)
    kbias = jnp.where(
        jax.lax.broadcasted_iota(jnp.int32, (1, seq), 1) < seq_real,
        jnp.float32(0.0), jnp.float32(-1e30))                       # (1, S)

    s = jnp.einsum('bqd,bkd->bqk', qh, kh,
                   preferred_element_type=jnp.float32) * scale + kbias
    s = s - jnp.max(s, axis=-1, keepdims=True)
    p = jnp.exp(s)
    p = p * pl.reciprocal(jnp.sum(p, axis=-1, keepdims=True), approx=True)
    oh = jnp.einsum('bqk,bkd->bqd', p.astype(jnp.bfloat16), vh,
                    preferred_element_type=jnp.float32)             # (Nb*H, S, dh)

    o2d = (oh.reshape(nb, n_heads, seq, dh)
             .transpose(0, 2, 1, 3)
             .reshape(tokens, width))
    attn = jnp.dot(o2d.astype(jnp.bfloat16), wo[...],
                   preferred_element_type=jnp.float32) + bo[...]
    x = x + attn.reshape(nb, seq, width)

    # ---- MLP (pre-LN, QuickGELU as in CLIP) ----
    h2 = ln(x, ln2_g, ln2_b)
    m = jnp.dot(h2.reshape(tokens, width).astype(jnp.bfloat16), w1[...],
                preferred_element_type=jnp.float32) + b1[...]
    m = m * jax.nn.sigmoid(1.702 * m)                               # QuickGELU
    m = jnp.dot(m.astype(jnp.bfloat16), w2[...],
                preferred_element_type=jnp.float32) + b2[...]
    o_ref[...] = (x + m.reshape(nb, seq, width)).astype(o_ref.dtype)


def _head_proj_kernel(x_ref, g_ref, b_ref, proj_ref, o_ref):
    """ln_post + text-embed projection on the cls row only. x_ref: (Nb, W) bf16."""
    x = x_ref[...].astype(jnp.float32)
    mu = jnp.mean(x, axis=-1, keepdims=True)
    var = jnp.mean(jnp.square(x - mu), axis=-1, keepdims=True)
    xn = (x - mu) * jax.lax.rsqrt(var + 1e-5) * g_ref[...] + b_ref[...]
    o_ref[...] = jnp.dot(xn.astype(jnp.bfloat16), proj_ref[...],
                         preferred_element_type=jnp.float32)


def _head_ln_kernel(x_ref, g_ref, b_ref, o_ref):
    """ln_post on the cls row only (no projection)."""
    x = x_ref[...].astype(jnp.float32)
    mu = jnp.mean(x, axis=-1, keepdims=True)
    var = jnp.mean(jnp.square(x - mu), axis=-1, keepdims=True)
    o_ref[...] = (x - mu) * jax.lax.rsqrt(var + 1e-5) * g_ref[...] + b_ref[...]


# ------------------------------ kernel wrappers ----------------------------- #

_PARALLEL_1D = pltpu.CompilerParams(dimension_semantics=("parallel",))


def _round_up(v, m):
    return ((v + m - 1) // m) * m


def _choose_block_frames(n_frames, s_pad):
    """Frames per grid step.

    Targets >=256 tokens (MXU M rows) per step when there is enough work; when
    the problem is small, uses at most two steps so v7x's two TensorCores can
    both be fed via the 'parallel' grid axis; never below 8 frames.
    """
    nb_big = _round_up(max(1, -(-256 // s_pad)), 8)      # 32 for S_pad = 8
    if n_frames >= 2 * nb_big:
        return nb_big
    return max(8, _round_up(-(-n_frames // 2), 8))


def embed_tokens(slab2d, conv_w, pos_cls, g, b, *, block_frames, n_frames_pad):
    """slab2d: (n_pad*S_pad, C*P*P) bf16 -> tokens (n_pad, S_pad, W) bf16."""
    kp = slab2d.shape[1]
    s_pad, width = pos_cls.shape
    rows = block_frames * s_pad
    return pl.pallas_call(
        _embed_kernel,
        grid=(n_frames_pad // block_frames,),
        out_shape=jax.ShapeDtypeStruct((n_frames_pad, s_pad, width), jnp.bfloat16),
        in_specs=[
            pl.BlockSpec((rows, kp), lambda i: (i, 0)),
            pl.BlockSpec(conv_w.shape, lambda i: (0, 0)),
            pl.BlockSpec(pos_cls.shape, lambda i: (0, 0)),
            pl.BlockSpec(g.shape, lambda i: (0, 0)),
            pl.BlockSpec(b.shape, lambda i: (0, 0)),
        ],
        out_specs=pl.BlockSpec((block_frames, s_pad, width), lambda i: (i, 0, 0)),
        compiler_params=_PARALLEL_1D,
    )(slab2d, conv_w, pos_cls, g, b)


def transformer_block(x, p, n_heads, seq_real, *, block_frames):
    """x: (N_pad, S_pad, W) bf16. Grid over frame chunks; weights stay resident."""
    n_pad, s_pad, width = x.shape
    weights = [p['ln1_g'], p['ln1_b'], p['wqkv'], p['bqkv'], p['wo'], p['bo'],
               p['ln2_g'], p['ln2_b'], p['w1'], p['b1'], p['w2'], p['b2']]
    in_specs = [pl.BlockSpec((block_frames, s_pad, width), lambda i: (i, 0, 0))]
    for w in weights:
        # constant-index BlockSpecs: weights stay resident across grid steps
        in_specs.append(pl.BlockSpec(w.shape, lambda i: (0, 0)))
    return pl.pallas_call(
        functools.partial(_block_kernel, n_heads=n_heads, seq_real=seq_real),
        grid=(n_pad // block_frames,),
        out_shape=jax.ShapeDtypeStruct((n_pad, s_pad, width), jnp.bfloat16),
        in_specs=in_specs,
        out_specs=pl.BlockSpec((block_frames, s_pad, width), lambda i: (i, 0, 0)),
        compiler_params=_PARALLEL_1D,
    )(x, *weights)


def pooled_head(h_cls, g, b, proj, *, block_frames):
    """h_cls: (N_pad, W) bf16 cls tokens -> pooled embeddings (N_pad, out_dim) f32."""
    n_pad, width = h_cls.shape
    grid = (n_pad // block_frames,)
    base_specs = [pl.BlockSpec((block_frames, width), lambda i: (i, 0)),
                  pl.BlockSpec(g.shape, lambda i: (0, 0)),
                  pl.BlockSpec(b.shape, lambda i: (0, 0))]
    if proj is not None:
        out_dim = proj.shape[1]
        return pl.pallas_call(
            _head_proj_kernel, grid=grid,
            out_shape=jax.ShapeDtypeStruct((n_pad, out_dim), jnp.float32),
            in_specs=base_specs + [pl.BlockSpec(proj.shape, lambda i: (0, 0))],
            out_specs=pl.BlockSpec((block_frames, out_dim), lambda i: (i, 0)),
            compiler_params=_PARALLEL_1D,
        )(h_cls, g, b, proj)
    return pl.pallas_call(
        _head_ln_kernel, grid=grid,
        out_shape=jax.ShapeDtypeStruct((n_pad, width), jnp.float32),
        in_specs=base_specs,
        out_specs=pl.BlockSpec((block_frames, width), lambda i: (i, 0)),
        compiler_params=_PARALLEL_1D,
    )(h_cls, g, b)


# --------------------------- model / parameters ---------------------------- #

_SYNTH_ARCHS = {
    # architecture string -> ViT config (synthetic, small, TPU lane-friendly)
    "ViT-Synth/8": dict(n_px=16, patch_size=8, width=128, layers=2, heads=2,
                        output_dim=128, in_ch=3),
}


def _init_visual_params(key, cfg, seq_pad):
    width = cfg["width"]
    p = cfg["patch_size"]
    c = cfg["in_ch"]
    n_patch = cfg["n_px"] // p
    num_patches = n_patch * n_patch
    std = 0.02
    keys = jax.random.split(key, 4 + cfg["layers"])

    pos = jax.random.normal(keys[2], (1 + num_patches, width), jnp.float32) * std
    pos = jnp.pad(pos, ((0, seq_pad - (1 + num_patches)), (0, 0)))

    params = dict(
        conv_w=(jax.random.normal(keys[0], (c * p * p, width), jnp.float32)
                * std).astype(jnp.bfloat16),
        cls=jax.random.normal(keys[1], (1, width), jnp.float32) * std,
        pos=pos,
        proj=(jax.random.normal(keys[3], (width, cfg["output_dim"]), jnp.float32)
              * std).astype(jnp.bfloat16),
        ln_pre_g=jnp.ones((1, width), jnp.float32),
        ln_pre_b=jnp.zeros((1, width), jnp.float32),
        ln_post_g=jnp.ones((1, width), jnp.float32),
        ln_post_b=jnp.zeros((1, width), jnp.float32),
        blocks=[],
    )
    for li in range(cfg["layers"]):
        bk = jax.random.split(keys[4 + li], 4)
        params["blocks"].append(dict(
            ln1_g=jnp.ones((1, width), jnp.float32),
            ln1_b=jnp.zeros((1, width), jnp.float32),
            wqkv=(jax.random.normal(bk[0], (width, 3 * width), jnp.float32)
                  * std).astype(jnp.bfloat16),
            bqkv=jnp.zeros((1, 3 * width), jnp.float32),
            wo=(jax.random.normal(bk[1], (width, width), jnp.float32)
                * std).astype(jnp.bfloat16),
            bo=jnp.zeros((1, width), jnp.float32),
            ln2_g=jnp.ones((1, width), jnp.float32),
            ln2_b=jnp.zeros((1, width), jnp.float32),
            w1=(jax.random.normal(bk[2], (width, 4 * width), jnp.float32)
                * std).astype(jnp.bfloat16),
            b1=jnp.zeros((1, 4 * width), jnp.float32),
            w2=(jax.random.normal(bk[3], (4 * width, width), jnp.float32)
                * std).astype(jnp.bfloat16),
            b2=jnp.zeros((1, width), jnp.float32),
        ))
    return params


class VideoAttrExtractor:
    """JAX/Pallas re-implementation of VideoAttrExtractor.forward.

    Parameters are synthesized deterministically (no checkpoint load).
    """

    def __init__(self, architecture, text_embed, store_attrs=(), attn_record=False,
                 pretrain=None, seed=0):
        # TODO(synk): torch.load / open_clip pretrained weight loading has no
        # Pallas equivalent; parameters are deterministic synthetic init.
        cfg = _SYNTH_ARCHS[architecture]
        self.cfg = cfg
        self.text_embed = bool(text_embed)
        self.store_attrs = tuple(store_attrs)
        self.attn_record = attn_record
        self.seq_real = 1 + (cfg["n_px"] // cfg["patch_size"]) ** 2
        # NOTE: for a real CLIP config (S~197), pad the sequence to a lane
        # multiple (256) instead of 8 so the attention matmuls are lane-dense.
        self.seq_pad = _round_up(self.seq_real, 8)
        self.params = _init_visual_params(jax.random.PRNGKey(seed), cfg, self.seq_pad)
        # fold the cls token into row 0 of the positional embedding: the cls
        # slot's patch row is zero, so matmul(0) + (pos0 + cls) == cls + pos0.
        self._pos_cls = self.params["pos"].at[0, :].add(self.params["cls"][0, :])
        self.feat_dim = cfg["output_dim"] if self.text_embed else cfg["width"]
        if not self.text_embed:
            self.params["proj"] = None

    # ---- properties mirroring the torch module ----
    @property
    def n_px(self):
        return self.cfg["n_px"]

    @property
    def n_layers(self):
        return self.cfg["layers"]

    @property
    def n_heads(self):
        return self.cfg["heads"]

    @property
    def patch_size(self):
        return self.cfg["patch_size"]

    @property
    def n_patch(self):
        return int(self.n_px // self.patch_size)

    @property
    def patch_num(self):
        return self.n_patch ** 2

    @property
    def embed_dim(self):
        return self.feat_dim

    # ---- forward ----
    def __call__(self, x):
        return self.forward(x)

    def forward(self, x):
        B, T, C, H, Wimg = x.shape
        assert H == self.n_px and Wimg == self.n_px and C == self.cfg["in_ch"]
        N = B * T
        P = self.patch_size
        width = self.cfg["width"]
        nh, nw = H // P, Wimg // P
        num_patches = nh * nw
        s_real, s_pad = self.seq_real, self.seq_pad
        nb = _choose_block_frames(N, s_pad)
        n_pad = _round_up(N, nb)

        # patch unfold (glue) == Conv2d(kernel=P, stride=P, bias=False) im2col,
        # pre-padded to (n_pad, S_pad, C*P*P) bf16 with zero cls/tail rows so
        # the embed kernel does one dense matmul + one dense store.
        xs = x.astype(jnp.float32).reshape(N, C, nh, P, nw, P)
        xs = xs.transpose(0, 2, 4, 1, 3, 5).reshape(N, num_patches, C * P * P)
        slab = jnp.pad(xs.astype(jnp.bfloat16),
                       ((0, n_pad - N), (1, s_pad - 1 - num_patches), (0, 0)))
        slab2d = slab.reshape(n_pad * s_pad, C * P * P)

        # fused: patch-embed matmul + (cls+pos) add + ln_pre  -> bf16 tokens
        h = embed_tokens(slab2d, self.params["conv_w"], self._pos_cls,
                         self.params["ln_pre_g"], self.params["ln_pre_b"],
                         block_frames=nb, n_frames_pad=n_pad)

        # transformer resblocks (one Pallas call each, bf16 residual carriage)
        per_layer_h = []
        for blk in self.params["blocks"]:
            h = transformer_block(h, blk, self.n_heads, s_real, block_frames=nb)
            per_layer_h.append(h)

        # collect attrs once at the end (avoids per-layer slice copies in the loop)
        layer_attrs = []
        for h_l in per_layer_h:
            attrs = {}
            if "out" in self.store_attrs:
                attrs["out"] = (h_l[:N, :s_real, :].astype(jnp.float32)
                                .reshape(B, T, s_real, width))
            # TODO(synk): attn_record (per-head attention maps / q,k,v hooks) not stored.
            layer_attrs.append(attrs)

        # fused: cls pooling + ln_post (+ optional text-embed proj); only the
        # cls row is fed to the head kernel (S_pad-fold less DMA).
        h_cls = h[:, 0, :]                                    # (n_pad, W) bf16
        pooled = pooled_head(h_cls, self.params["ln_post_g"], self.params["ln_post_b"],
                             self.params["proj"] if self.text_embed else None,
                             block_frames=nb)
        embeds = pooled[:N].reshape(B, T, -1)
        return dict(layer_attrs=layer_attrs, embeds=embeds)

    def train(self, mode=True):
        return self


# --------------------------------- main ------------------------------------ #

if __name__ == "__main__":
    key = jax.random.PRNGKey(0)
    B, T, C, H, W = 2, 2, 3, 16, 16
    x = jax.random.normal(key, (B, T, C, H, W), jnp.float32)

    extractor = VideoAttrExtractor("ViT-Synth/8", text_embed=True,
                                   store_attrs=["out"], seed=0)
    out = extractor(x)

    embeds = jax.block_until_ready(out["embeds"])
    for attrs in out["layer_attrs"]:
        for v in attrs.values():
            jax.block_until_ready(v)

    assert embeds.shape == (B, T, extractor.embed_dim)
    assert len(out["layer_attrs"]) == extractor.n_layers
    assert bool(jnp.all(jnp.isfinite(embeds)))
    print("KERNEL_OK")
</pallas_src>

<mosaic_0001>
module attributes {stable_mosaic.version = 11 : i64} {
  func.func @_embed_kernel(%arg0: i32, %arg1: memref<64x192xbf16, #tpu.memory_space<vmem>>, %arg2: memref<192x128xbf16, #tpu.memory_space<vmem>>, %arg3: memref<8x128xf32, #tpu.memory_space<vmem>>, %arg4: memref<1x128xf32, #tpu.memory_space<vmem>>, %arg5: memref<1x128xf32, #tpu.memory_space<vmem>>, %arg6: memref<8x8x128xbf16, #tpu.memory_space<vmem>>) attributes {dimension_semantics = [#tpu.dimension_semantics<parallel>], iteration_bounds = array<i64: 1>, scalar_prefetch = 0 : i64, scratch_operands = 0 : i64, tpu.core_type = #tpu.core_type<tc>, window_params = [{transform_indices = @transform_0, window_bounds = array<i64: 64, 192>}, {pipeline_mode = #tpu.pipeline_mode<synchronous>, transform_indices = @transform_1, window_bounds = array<i64: 192, 128>}, {pipeline_mode = #tpu.pipeline_mode<synchronous>, transform_indices = @transform_2, window_bounds = array<i64: 8, 128>}, {pipeline_mode = #tpu.pipeline_mode<synchronous>, transform_indices = @transform_3, window_bounds = array<i64: 1, 128>}, {pipeline_mode = #tpu.pipeline_mode<synchronous>, transform_indices = @transform_4, window_bounds = array<i64: 1, 128>}, {transform_indices = @transform_5, window_bounds = array<i64: 8, 8, 128>}]} {
    %c0 = arith.constant 0 : index
    %c0_0 = arith.constant 0 : index
    %0 = vector.load %arg1[%c0, %c0_0] : memref<64x192xbf16, #tpu.memory_space<vmem>>, vector<64x192xbf16>
    %c0_1 = arith.constant 0 : index
    %c0_2 = arith.constant 0 : index
    %1 = vector.load %arg2[%c0_1, %c0_2] : memref<192x128xbf16, #tpu.memory_space<vmem>>, vector<192x128xbf16>
    %cst = arith.constant dense<0.000000e+00> : vector<64x128xf32>
    %2 = tpu.matmul %0, %1, %cst {dimension_numbers = #tpu.dot_dimension_numbers<[1], [0], [0], [1], [0, 0, 1, 1], [], []>} : vector<64x192xbf16>, vector<192x128xbf16>, vector<64x128xf32> -> vector<64x128xf32>
    %3 = vector.shape_cast %2 : vector<64x128xf32> to vector<8x8x128xf32>
    %c0_3 = arith.constant 0 : index
    %c0_4 = arith.constant 0 : index
    %4 = vector.load %arg3[%c0_3, %c0_4] : memref<8x128xf32, #tpu.memory_space<vmem>>, vector<8x128xf32>
    %5 = vector.shape_cast %4 : vector<8x128xf32> to vector<1x8x128xf32>
    %6 = vector.broadcast %5 : vector<1x8x128xf32> to vector<8x8x128xf32>
    %7 = arith.addf %3, %6 : vector<8x8x128xf32>
    %cst_5 = arith.constant dense<0.000000e+00> : vector<8x8xf32>
    %8 = vector.multi_reduction <add>, %7, %cst_5 [2] : vector<8x8x128xf32> to vector<8x8xf32>
    %9 = vector.shape_cast %8 : vector<8x8xf32> to vector<8x8x1xf32>
    %cst_6 = arith.constant 1.280000e+02 : f32
    %10 = vector.broadcast %cst_6 : f32 to vector<8x8x1xf32>
    %11 = arith.divf %9, %10 : vector<8x8x1xf32>
    %12 = vector.broadcast %11 : vector<8x8x1xf32> to vector<8x8x128xf32>
    %13 = arith.subf %7, %12 : vector<8x8x128xf32>
    %14 = arith.mulf %13, %13 : vector<8x8x128xf32>
    %cst_7 = arith.constant dense<0.000000e+00> : vector<8x8xf32>
    %15 = vector.multi_reduction <add>, %14, %cst_7 [2] : vector<8x8x128xf32> to vector<8x8xf32>
    %16 = vector.shape_cast %15 : vector<8x8xf32> to vector<8x8x1xf32>
    %cst_8 = arith.constant 1.280000e+02 : f32
    %17 = vector.broadcast %cst_8 : f32 to vector<8x8x1xf32>
    %18 = arith.divf %16, %17 : vector<8x8x1xf32>
    %19 = vector.broadcast %11 : vector<8x8x1xf32> to vector<8x8x128xf32>
    %20 = arith.subf %7, %19 : vector<8x8x128xf32>
    %cst_9 = arith.constant 9.99999974E-6 : f32
    %21 = vector.broadcast %cst_9 : f32 to vector<8x8x1xf32>
    %22 = arith.addf %18, %21 : vector<8x8x1xf32>
    %23 = math.rsqrt %22 : vector<8x8x1xf32>
    %24 = vector.broadcast %23 : vector<8x8x1xf32> to vector<8x8x128xf32>
    %25 = arith.mulf %20, %24 : vector<8x8x128xf32>
    %c0_10 = arith.constant 0 : index
    %c0_11 = arith.constant 0 : index
    %26 = vector.load %arg4[%c0_10, %c0_11] : memref<1x128xf32, #tpu.memory_space<vmem>>, vector<1x128xf32>
    %27 = vector.shape_cast %26 : vector<1x128xf32> to vector<1x1x128xf32>
    %28 = vector.broadcast %27 : vector<1x1x128xf32> to vector<8x8x128xf32>
    %29 = arith.mulf %25, %28 : vector<8x8x128xf32>
    %c0_12 = arith.constant 0 : index
    %c0_13 = arith.constant 0 : index
    %30 = vector.load %arg5[%c0_12, %c0_13] : memref<1x128xf32, #tpu.memory_space<vmem>>, vector<1x128xf32>
    %31 = vector.shape_cast %30 : vector<1x128xf32> to vector<1x1x128xf32>
    %32 = vector.broadcast %31 : vector<1x1x128xf32> to vector<8x8x128xf32>
    %33 = arith.addf %29, %32 : vector<8x8x128xf32>
    %34 = arith.truncf %33 : vector<8x8x128xf32> to vector<8x8x128xbf16>
    %c0_14 = arith.constant 0 : index
    %c0_15 = arith.constant 0 : index
    %c0_16 = arith.constant 0 : index
    %35 = vector.load %arg6[%c0_14, %c0_15, %c0_16] : memref<8x8x128xbf16, #tpu.memory_space<vmem>>, vector<8x8x128xbf16>
    tpu.vector_store %arg6[%c0_14, %c0_15, %c0_16], %34 {strides = array<i32>} : memref<8x8x128xbf16, #tpu.memory_space<vmem>>, vector<8x8x128xbf16>,
    return
  }
  func.func @transform_0(%arg0: i32) -> (i32, i32) {
    %c0_i32 = arith.constant 0 : i32
    %c0_i32_0 = arith.constant 0 : i32
    return %arg0, %c0_i32 : i32, i32
  }
  func.func @transform_1(%arg0: i32) -> (i32, i32) {
    %c0_i32 = arith.constant 0 : i32
    %c0_i32_0 = arith.constant 0 : i32
    %c0_i32_1 = arith.constant 0 : i32
    return %c0_i32, %c0_i32_0 : i32, i32
  }
  func.func @transform_2(%arg0: i32) -> (i32, i32) {
    %c0_i32 = arith.constant 0 : i32
    %c0_i32_0 = arith.constant 0 : i32
    %c0_i32_1 = arith.constant 0 : i32
    return %c0_i32, %c0_i32_0 : i32, i32
  }
  func.func @transform_3(%arg0: i32) -> (i32, i32) {
    %c0_i32 = arith.constant 0 : i32
    %c0_i32_0 = arith.constant 0 : i32
    %c0_i32_1 = arith.constant 0 : i32
    return %c0_i32, %c0_i32_0 : i32, i32
  }
  func.func @transform_4(%arg0: i32) -> (i32, i32) {
    %c0_i32 = arith.constant 0 : i32
    %c0_i32_0 = arith.constant 0 : i32
    %c0_i32_1 = arith.constant 0 : i32
    return %c0_i32, %c0_i32_0 : i32, i32
  }
  func.func @transform_5(%arg0: i32) -> (i32, i32, i32) {
    %c0_i32 = arith.constant 0 : i32
    %c0_i32_0 = arith.constant 0 : i32
    %c0_i32_1 = arith.constant 0 : i32
    return %arg0, %c0_i32, %c0_i32_0 : i32, i32, i32
  }
}

</mosaic_0001>

<bundles_post_ra>
// kernel: tpu_custom_call.1
= control target key start
LH: loop header
LB: loop body
LE: loop exit
PB: predicated region body
PF: predicated region fallthrough
CT: control target
= control target key end

     0   :  { %10 = vsyncpa [#allocation3], 0  ;;  %s756_s0 = inlined_call_operand.hbm [shape: bf16[64,192], index: 0, kind: input, shape index: {}]   ;;  %s757_s1 = inlined_call_operand.hbm [shape: bf16[192,128], index: 1, kind: input, shape index: {}]   ;;  %s758_s2 = inlined_call_operand.hbm [shape: f32[8,128], index: 2, kind: input, shape index: {}]   ;;  %s759_s3 = inlined_call_operand.vmem [shape: f32[1,128], index: 3, kind: input, shape index: {}]   ;;  %s760_s4 = inlined_call_operand.vmem [shape: f32[1,128], index: 4, kind: input, shape index: {}]   ;;  %s761_s5 = inlined_call_operand.hbm [shape: bf16[8,8,128], index: 5, kind: output, shape index: {}]  }
   0x1   :  { %11 = vsyncpa [#allocation6], 0 }
   0x2   :  { %12 = vsyncpa [#allocation4], 0  ;;  %s649_s18 = smov [#allocation5]  }
   0x3   :  { %s30_s19 = sshll.u32 %s649_s18, 4  ;;  %s31_s19 = int_to_ptr.vmem [resolvable:$true] %s30_s19 }
   0x4   :  { %s571_s20 = scalar_lea.vmem %s31_s19, 1536  ;;  %p576_p1 = scmp.lt.s32.totalorder %s31_s19, %s31_s19 }
   0x5   :  { %p572_p0 = scmp.ne.s32.totalorder %s31_s19, %s571_s20  ;;  %p577_p2 = scmp.lt.s32.totalorder %s571_s20, %s571_s20 }
   0x7   :  { %p578_p3 = por %p577_p2, %p576_p1 }
   0x9   :  { %p579_p4 = pnand %p578_p3, %p572_p0 }
   0xb   :  { %582 = shalt.err (!%p579_p4)
}
   0xc   :  { %s650_s21 = smov 64   ;;  %s651_s22 = smov 4  }
   0xd   :  { %36 = dma.hbm_to_vmem [thread:$0]  %s757_s1, 1536, %s31_s19, [#allocation6], %s650_s21, %s650_s21, %s651_s22  }
   0xe   :  { %s652_s25 = smov [#allocation2]  }
   0xf   :  { %s18_s26 = sshll.u32 %s652_s25, 4  ;;  %s19_s26 = int_to_ptr.vmem [resolvable:$true] %s18_s26 }
  0x10   :  { %s591_s27 = scalar_lea.vmem %s19_s26, 1024  ;;  %p596_p6 = scmp.lt.s32.totalorder %s19_s26, %s19_s26 }
  0x11   :  { %p592_p5 = scmp.ne.s32.totalorder %s19_s26, %s591_s27  ;;  %p597_p7 = scmp.lt.s32.totalorder %s591_s27, %s591_s27 }
  0x13   :  { %p598_p8 = por %p597_p7, %p596_p6 }
  0x15   :  { %p599_p9 = pnand %p598_p8, %p592_p5 }
  0x17   :  { %602 = shalt.err (!%p599_p9)
}
  0x18   :  { %s653_s28 = smov 128   ;;  %s654_s29 = smov 8  }
  0x19   :  { %24 = dma.hbm_to_vmem [thread:$0]  %s756_s0, 1024, %s19_s26, [#allocation3], %s653_s28, %s653_s28, %s654_s29  }
  0x1a   :  { %s655_s7 = smov [#allocation7]  }
  0x1b   :  { %s43_s8 = sshll.u32 %s655_s7, 4  ;;  %s44_s8 = int_to_ptr.vmem [resolvable:$true] %s43_s8 }
  0x1c   :  { %s611_s1 = scalar_lea.vmem %s44_s8, 128  ;;  %p616_p11 = scmp.lt.s32.totalorder %s44_s8, %s44_s8 }
  0x1d   :  { %p612_p10 = scmp.ne.s32.totalorder %s44_s8, %s611_s1  ;;  %p617_p12 = scmp.lt.s32.totalorder %s611_s1, %s611_s1 }
  0x1f   :  { %p618_p13 = por %p617_p12, %p616_p11 }
  0x21   :  { %p619_p0 = pnand %p618_p13, %p612_p10 }
  0x23   :  { %622 = shalt.err (!%p619_p0)
}
  0x24   :  { %46 = dma.hbm_to_vmem [thread:$0]  %s758_s2, 128, %s44_s8, [#allocation6]  }
  0x25   :  { %643 = dma.done.wait [#allocation3], 1024  }
  0x26   :  { %644 = vsyncadd [#allocation3], 4294966272 }
  0x27   :  { %645 = dma.done.wait [#allocation6], 1664  }
  0x28   :  { %646 = vsyncadd [#allocation6], 4294965632  ;;  %v656_v0 = vmov 0   ;;  %v523_v1 = vld [vmem:[#allocation5 + $0x38] sm:$0xff]   ;;  %v524_v2 = vld [vmem:[#allocation5 + $0x30] sm:$0xff]   ;;  %vm201_vm0 = vcmask 523264  }
  0x29   :  { %214 = vmatprep.subr.bf16.mxu0 %v656_v0  ;;  %490 = vmatprep.subr.bf16.mxu1 %v656_v0  ;;  %v525_v3 = vld [vmem:[#allocation5 + $0x28] sm:$0xff]   ;;  %v526_v4 = vld [vmem:[#allocation5 + $0x20] sm:$0xff]   ;;  %v527_v6 = vld [vmem:[#allocation5 + $0x18] sm:$0xff]  }
  0x2a   :  { %215 = vmatpush1.bf16.msra.mxu0 %v523_v1  ;;  %502 = vmatpush1.bf16.msra.mxu1 %v523_v1  ;;  %v537_v5 = vld [vmem:[#allocation2 + $0x4] ss:$8 sps:$4 sm:$0xff]   ;;  %v528_v8 = vld [vmem:[#allocation5 + $0x10] sm:$0xff]   ;;  %v531_v11 = vld [vmem:[#allocation5 + $0x58] sm:$0xff]  }
  0x2b   :  { %216 = vmatprep.subr.bf16.mxu0 %v656_v0  ;;  %491 = vmatprep.subr.bf16.mxu1 %v656_v0  ;;  %v540_v7 = vld [vmem:[#allocation2 + $0x24] ss:$8 sps:$4 sm:$0xff]   ;;  %v532_v12 = vld [vmem:[#allocation5 + $0x50] sm:$0xff]   ;;  %v535_v15 = vld [vmem:[#allocation2] ss:$8 sps:$4 sm:$0xff]  }
  0x2c   :  { %461 = vmatprep.mubr.msk.bf16.mxu0 %vm201_vm0, %v537_v5  ;;  %463 = vmatprep.mubr.msk.bf16.mxu1 %vm201_vm0, %v540_v7  ;;  %v529_v9 = vld [vmem:[#allocation5 + $0x8] sm:$0xff]   ;;  %v530_v10 = vld [vmem:[#allocation5] sm:$0xff]   ;;  %v541_v17 = vld [vmem:[#allocation2 + $0x14] ss:$8 sps:$4 sm:$0xff]  }
  0x2d   :  { %v533_v13 = vld [vmem:[#allocation5 + $0x48] sm:$0xff]   ;;  %v534_v14 = vld [vmem:[#allocation5 + $0x40] sm:$0xff]   ;;  %v544_v18 = vld [vmem:[#allocation2 + $0x34] ss:$8 sps:$4 sm:$0xff]  }
  0x2e   :  { %217 = vmatpush1.bf16.msra.mxu0 %v524_v2  ;;  %503 = vmatpush1.bf16.msra.mxu1 %v524_v2  ;;  %v538_v16 = vld [vmem:[#allocation2 + $0x20] ss:$8 sps:$4 sm:$0xff]   ;;  %v543_v19 = vld [vmem:[#allocation2 + $0x10] ss:$8 sps:$4 sm:$0xff]  }
  0x2f   :  { %218 = vmatprep.subr.bf16.mxu0 %v656_v0  ;;  %492 = vmatprep.subr.bf16.mxu1 %v656_v0  ;;  %v546_v20 = vld [vmem:[#allocation2 + $0x30] ss:$8 sps:$4 sm:$0xff]   ;;  %v279_v21 = vld [vmem:[#allocation7] sm:$0xff] }
  0x32   :  { %219 = vmatpush1.bf16.msra.mxu0 %v525_v3  ;;  %504 = vmatpush1.bf16.msra.mxu1 %v525_v3 }
  0x33   :  { %220 = vmatprep.subr.bf16.mxu0 %v656_v0  ;;  %493 = vmatprep.subr.bf16.mxu1 %v656_v0 }
  0x36   :  { %221 = vmatpush1.bf16.msra.mxu0 %v526_v4  ;;  %505 = vmatpush1.bf16.msra.mxu1 %v526_v4 }
  0x37   :  { %222 = vmatprep.subr.bf16.mxu0 %v656_v0  ;;  %494 = vmatprep.subr.bf16.mxu1 %v656_v0 }
  0x3a   :  { %223 = vmatpush1.bf16.msra.mxu0 %v527_v6  ;;  %506 = vmatpush1.bf16.msra.mxu1 %v527_v6 }
  0x3b   :  { %224 = vmatprep.subr.bf16.mxu0 %v656_v0  ;;  %495 = vmatprep.subr.bf16.mxu1 %v656_v0 }
  0x3e   :  { %225 = vmatpush1.bf16.msra.mxu0 %v528_v8  ;;  %507 = vmatpush1.bf16.msra.mxu1 %v528_v8 }
  0x3f   :  { %226 = vmatprep.subr.bf16.mxu0 %v656_v0  ;;  %496 = vmatprep.subr.bf16.mxu1 %v656_v0 }
  0x42   :  { %227 = vmatpush1.bf16.msra.mxu0 %v529_v9  ;;  %508 = vmatpush1.bf16.msra.mxu1 %v529_v9 }
  0x43   :  { %228 = vmatprep.subr.bf16.mxu0 %v656_v0  ;;  %497 = vmatprep.subr.bf16.mxu1 %v656_v0 }
  0x46   :  { %229 = vmatpush1.bf16.msra.mxu0 %v530_v10  ;;  %509 = vmatpush1.bf16.msra.mxu1 %v530_v10 }
  0x47   :  { %238 = vmatprep.subr.bf16.mxu0 %v656_v0  ;;  %498 = vmatprep.subr.bf16.mxu1 %v656_v0 }
  0x4a   :  { %239 = vmatpush2.bf16.msra.mxu0 %v531_v11  ;;  %510 = vmatpush2.bf16.msra.mxu1 %v531_v11 }
  0x4b   :  { %240 = vmatprep.subr.bf16.mxu0 %v656_v0  ;;  %499 = vmatprep.subr.bf16.mxu1 %v656_v0 }
  0x4e   :  { %241 = vmatpush2.bf16.msra.mxu0 %v532_v12  ;;  %511 = vmatpush2.bf16.msra.mxu1 %v532_v12 }
  0x4f   :  { %242 = vmatprep.subr.bf16.mxu0 %v656_v0  ;;  %500 = vmatprep.subr.bf16.mxu1 %v656_v0 }
  0x52   :  { %243 = vmatpush2.bf16.msra.mxu0 %v533_v13  ;;  %512 = vmatpush2.bf16.msra.mxu1 %v533_v13 }
  0x53   :  { %244 = vmatprep.subr.bf16.mxu0 %v656_v0  ;;  %501 = vmatprep.subr.bf16.mxu1 %v656_v0 }
  0x56   :  { %245 = vmatpush2.bf16.msra.mxu0 %v534_v14  ;;  %513 = vmatpush2.bf16.msra.mxu1 %v534_v14 }
  0x59   :  { %247 = vmatmul.mubr.bf16.vlgmr.msra.gmra.mxu0 %v535_v15  ;;  %263 = vmatmul.mubr.bf16.vlgmr.msra.gmra.mxu1 %v538_v16 }
  0x5a   :  { %462 = vmatprep.mubr.msk.bf16.mxu0 %vm201_vm0, %v541_v17  ;;  %464 = vmatprep.mubr.msk.bf16.mxu1 %vm201_vm0, %v544_v18 }
  0x61   :  { %255 = vmatmul.mubr.bf16.gmra.mxu0 %v543_v19  ;;  %271 = vmatmul.mubr.bf16.gmra.mxu1 %v546_v20 }
 0x119   :  { %v248_v22 = vpop.f32.mrf.mxu0  ;;  %v264_v23 = vpop.f32.mrf.mxu1 }
 0x11a   :  { %v280_v24 = vadd.f32 %v279_v21, %v248_v22  ;;  %v284_v27 = vadd.f32 %v279_v21, %v264_v23 }
 0x11b   :  { %v250_v25 = vpop.f32.mrf.mxu0  ;;  %v266_v26 = vpop.f32.mrf.mxu1 }
 0x11c   :  { %288 = vadd.xlane.f32.xlu0 %v280_v24 }
 0x11d   :  { %v251_v28 = vpop.f32.mrf.mxu0  ;;  %v267_v29 = vpop.f32.mrf.mxu1 }
 0x11e   :  { %v285_v30 = vadd.f32 %v279_v21, %v267_v29  ;;  %v281_v35 = vadd.f32 %v279_v21, %v251_v28 }
 0x11f   :  { %v253_v31 = vpop.f32.mrf.mxu0  ;;  %v269_v32 = vpop.f32.mrf.mxu1 }
 0x120   :  { %298 = vadd.xlane.f32.xlu1 %v285_v30  ;;  %296 = vadd.xlane.f32.xlu0 %v284_v27 }
 0x121   :  { %v256_v33 = vpop.f32.mrf.mxu0  ;;  %v272_v34 = vpop.f32.mrf.mxu1 }
 0x122   :  { %v282_v36 = vadd.f32 %v279_v21, %v256_v33  ;;  %v286_v39 = vadd.f32 %v279_v21, %v272_v34 }
 0x123   :  { %v258_v37 = vpop.f32.mrf.mxu0  ;;  %v274_v38 = vpop.f32.mrf.mxu1 }
 0x124   :  { %290 = vadd.xlane.f32.xlu0 %v281_v35  ;;  %292 = vadd.xlane.f32.xlu1 %v282_v36 }
 0x125   :  { %v259_v40 = vpop.f32.mrf.mxu0  ;;  %v275_v41 = vpop.f32.mrf.mxu1 }
 0x126   :  { %v283_v42 = vadd.f32 %v279_v21, %v259_v40  ;;  %v287_v45 = vadd.f32 %v279_v21, %v275_v41  ;;  %v465_v41 = vld [vmem:[%s759_s3] ss:$0 sm:$0xff]  ;;  %s657_s3 = smov [#allocation8]  }
 0x127   :  { %v261_v43 = vpop.f32.mrf.mxu0  ;;  %v277_v44 = vpop.f32.mrf.mxu1 }
 0x128   :  { %300 = vadd.xlane.f32.xlu0 %v286_v39  ;;  %294 = vadd.xlane.f32.xlu1 %v283_v42 }
 0x12c   :  { %302 = vadd.xlane.f32.xlu1 %v287_v45 }
 0x1a5   :  { %v289_v46 = vpop.xlane.xlu0 %288 }
 0x1a6   :  { %v305_v47 = vmul.f32 0.0078125, %v289_v46 }
 0x1a8   :  { %v704_v48 = vsub.f32 %v280_v24, %v305_v47  ;;  %v466_v47 = vld [vmem:[%s760_s4] ss:$0 sm:$0xff]  ;;  %s428_s4 = sshll.u32 %s657_s3, 4  ;;  %s429_s4 = int_to_ptr.vmem [resolvable:$true] %s428_s4 }
 0x1a9   :  { %v299_v49 = vpop.xlane.xlu1 %298  ;;  %v297_v50 = vpop.xlane.xlu0 %296  ;;  %s623_s13 = scalar_lea.vmem %s429_s4, 512  ;;  %p628_p2 = scmp.lt.s32.totalorder %s429_s4, %s429_s4 }
 0x1aa   :  { %v309_v51 = vmul.f32 0.0078125, %v297_v50  ;;  %v321_v52 = vmul.f32 %v704_v48, %v704_v48  ;;  %v310_v54 = vmul.f32 0.0078125, %v299_v49  ;;  %p624_p1 = scmp.ne.s32.totalorder %s429_s4, %s623_s13  ;;  %p629_p3 = scmp.lt.s32.totalorder %s623_s13, %s623_s13 }
 0x1ac   :  { %v708_v53 = vsub.f32 %v284_v27, %v309_v51  ;;  %329 = vadd.xlane.f32.xlu0 %v321_v52  ;;  %v716_v62 = vsub.f32 %v285_v30, %v310_v54  ;;  %p630_p4 = por %p629_p3, %p628_p2 }
 0x1ad   :  { %v291_v55 = vpop.xlane.xlu0 %290  ;;  %v293_v56 = vpop.xlane.xlu1 %292 }
 0x1ae   :  { %v306_v57 = vmul.f32 0.0078125, %v291_v55  ;;  %v307_v58 = vmul.f32 0.0078125, %v293_v56  ;;  %v325_v59 = vmul.f32 %v708_v53, %v708_v53  ;;  %v326_v10 = vmul.f32 %v716_v62, %v716_v62  ;;  %p631_p5 = pnand %p630_p4, %p624_p1 }
 0x1b0   :  { %v712_v60 = vsub.f32 %v281_v35, %v306_v57  ;;  %v714_v61 = vsub.f32 %v282_v36, %v307_v58  ;;  %337 = vadd.xlane.f32.xlu0 %v325_v59 }
 0x1b1   :  { %v301_v63 = vpop.xlane.xlu0 %300  ;;  %v295_v0 = vpop.xlane.xlu1 %294 }
 0x1b2   :  { %v311_v1 = vmul.f32 0.0078125, %v301_v63  ;;  %v308_v2 = vmul.f32 0.0078125, %v295_v0  ;;  %v323_v3 = vmul.f32 %v714_v61, %v714_v61  ;;  %v322_v4 = vmul.f32 %v712_v60, %v712_v60 }
 0x1b4   :  { %v722_v5 = vsub.f32 %v286_v39, %v311_v1  ;;  %333 = vadd.xlane.f32.xlu0 %v323_v3  ;;  %331 = vadd.xlane.f32.xlu1 %v322_v4  ;;  %v724_v7 = vsub.f32 %v283_v42, %v308_v2 }
 0x1b5   :  { %v303_v6 = vpop.xlane.xlu1 %302 }
 0x1b6   :  { %v312_v8 = vmul.f32 0.0078125, %v303_v6  ;;  %v327_v9 = vmul.f32 %v722_v5, %v722_v5  ;;  %v324_v12 = vmul.f32 %v724_v7, %v724_v7 }
 0x1b8   :  { %341 = vadd.xlane.f32.xlu0 %v327_v9  ;;  %339 = vadd.xlane.f32.xlu1 %v326_v10  ;;  %v730_v11 = vsub.f32 %v287_v45, %v312_v8 }
 0x1ba   :  { %v328_v13 = vmul.f32 %v730_v11, %v730_v11 }
 0x1bc   :  { %335 = vadd.xlane.f32.xlu1 %v324_v12 }
 0x1c0   :  { %343 = vadd.xlane.f32.xlu1 %v328_v13 }
 0x235   :  { %v330_v14 = vpop.xlane.xlu0 %329 }
 0x236   :  { %v345_v15 = vmul.f32 0.0078125, %v330_v14 }
 0x238   :  { %v353_v16 = vadd.f32 1e-05, %v345_v15 }
 0x239   :  { %v338_v17 = vpop.xlane.xlu0 %337 }
 0x23a   :  { %v349_v18 = vmul.f32 0.0078125, %v338_v17  ;;  %547 = vrsqrt.f32 %v353_v16 }
 0x23c   :  { %v357_v19 = vadd.f32 1e-05, %v349_v18 }
 0x23d   :  { %v334_v20 = vpop.xlane.xlu0 %333  ;;  %v332_v21 = vpop.xlane.xlu1 %331 }
 0x23e   :  { %v347_v22 = vmul.f32 0.0078125, %v334_v20  ;;  %v346_v23 = vmul.f32 0.0078125, %v332_v21  ;;  %549 = vrsqrt.f32 %v357_v19 }
 0x240   :  { %v355_v24 = vadd.f32 1e-05, %v347_v22  ;;  %v354_v25 = vadd.f32 1e-05, %v346_v23 }
 0x241   :  { %v342_v26 = vpop.xlane.xlu0 %341  ;;  %v340_v27 = vpop.xlane.xlu1 %339 }
 0x242   :  { %v351_v28 = vmul.f32 0.0078125, %v342_v26  ;;  %v350_v29 = vmul.f32 0.0078125, %v340_v27  ;;  %551 = vrsqrt.f32 %v354_v25 }
 0x243   :  { %553 = vrsqrt.f32 %v355_v24 }
 0x244   :  { %v359_v30 = vadd.f32 1e-05, %v351_v28  ;;  %v358_v31 = vadd.f32 1e-05, %v350_v29 }
 0x245   :  { %v336_v32 = vpop.xlane.xlu1 %335 }
 0x246   :  { %v348_v33 = vmul.f32 0.0078125, %v336_v32  ;;  %555 = vrsqrt.f32 %v358_v31 }
 0x247   :  { %557 = vrsqrt.f32 %v359_v30  ;;  %v548_v36 = vpop.eup %547 }
 0x248   :  { %v356_v34 = vadd.f32 1e-05, %v348_v33  ;;  %v369_v39 = vmul.f32 %v548_v36, %v704_v48 }
 0x249   :  { %v344_v35 = vpop.xlane.xlu1 %343 }
 0x24a   :  { %559 = vrsqrt.f32 %v356_v34  ;;  %v352_v37 = vmul.f32 0.0078125, %v344_v35  ;;  %v384_v46 = vmul.f32 %v465_v41, %v369_v39 }
 0x24b   :  { %v550_v40 = vpop.eup %549 }
 0x24c   :  { %v360_v38 = vadd.f32 1e-05, %v352_v37  ;;  %v373_v44 = vmul.f32 %v550_v40, %v708_v53  ;;  %v399_v55 = vadd.f32 %v466_v47, %v384_v46 }
 0x24e   :  { %561 = vrsqrt.f32 %v360_v38  ;;  %v388_v54 = vmul.f32 %v465_v41, %v373_v44 }
 0x24f   :  { %v552_v42 = vpop.eup %551 }
 0x250   :  { %v554_v43 = vpop.eup %553  ;;  %v370_v45 = vmul.f32 %v552_v42, %v712_v60  ;;  %v403_v0 = vadd.f32 %v466_v47, %v388_v54 }
 0x251   :  { %v371_v48 = vmul.f32 %v554_v43, %v714_v61 }
 0x252   :  { %v385_v49 = vmul.f32 %v465_v41, %v370_v45 }
 0x253   :  { %v556_v50 = vpop.eup %555  ;;  %v386_v63 = vmul.f32 %v465_v41, %v371_v48 }
 0x254   :  { %v558_v51 = vpop.eup %557  ;;  %v374_v52 = vmul.f32 %v556_v50, %v716_v62  ;;  %v400_v56 = vadd.f32 %v466_v47, %v385_v49 }
 0x255   :  { %v375_v59 = vmul.f32 %v558_v51, %v722_v5  ;;  %v401_v6 = vadd.f32 %v466_v47, %v386_v63 }
 0x256   :  { %v389_v58 = vmul.f32 %v465_v41, %v374_v52  ;;  %v470_v53 = vpack.c.bf16 %v400_v56, %v399_v55 }
 0x257   :  { %v560_v57 = vpop.eup %559  ;;  %v390_v62 = vmul.f32 %v465_v41, %v375_v59 }
 0x258   :  { %v372_v60 = vmul.f32 %v560_v57, %v724_v7  ;;  %v404_v1 = vadd.f32 %v466_v47, %v389_v58  ;;  %471 = vst [vmem:[#allocation8] sm:$0xff] %v470_v53  }
 0x259   :  { %v405_v5 = vadd.f32 %v466_v47, %v390_v62 }
 0x25a   :  { %v387_v2 = vmul.f32 %v465_v41, %v372_v60  ;;  %v480_v61 = vpack.c.bf16 %v404_v1, %v403_v0 }
 0x25b   :  { %v562_v3 = vpop.eup %561 }
 0x25c   :  { %v376_v4 = vmul.f32 %v562_v3, %v730_v11  ;;  %v402_v8 = vadd.f32 %v466_v47, %v387_v2  ;;  %488 = vst [vmem:[#allocation8 + $0x10] sm:$0xff] %v480_v61  }
 0x25e   :  { %v391_v9 = vmul.f32 %v465_v41, %v376_v4  ;;  %v475_v10 = vpack.c.bf16 %v402_v8, %v401_v6 }
 0x260   :  { %v406_v12 = vadd.f32 %v466_v47, %v391_v9  ;;  %487 = vst [vmem:[#allocation8 + $0x8] sm:$0xff] %v475_v10  }
 0x262   :  { %v485_v7 = vpack.c.bf16 %v406_v12, %v405_v5 }
 0x264   :  { %489 = vst [vmem:[#allocation8 + $0x18] sm:$0xff] %v485_v7  }
 0x265   :  { %634 = shalt.err (!%p631_p5)
}
 0x266   :  { %434 = dma.vmem_to_hbm [thread:$0]  %s429_s4, 512, %s761_s5, [#allocation4], %s650_s21, %s650_s21, %s651_s22  }
 0x267   :  { %647 = dma.done.wait [#allocation4], 512  }
 0x268   :  { %648 = vsyncadd [#allocation4], 4294966784 }
 0x269   :  { %438 = vsyncpa [#allocation3], 1 }
 0x26a   :  { %439 = vsyncpa [#allocation6], 1 }
 0x26b   :  { %440 = vsyncpa [#allocation4], 1 }

</bundles_post_ra>
